<compile_context>
chip_gen: v7x
topology: tpu7x:2x2x1
jax: 0.10.0
libtpu: 0.0.40
codegen_flags: <defaults>
</compile_context>

<pallas_src>
import functools
import math

import jax
import jax.numpy as jnp
from jax.experimental import pallas as pl
from jax.experimental.pallas import tpu as pltpu


def gcn_kernel(x_ref, w_ref, adj_ref, out_ref, *, skip=True, compute_dtype=None):
    """One (batch, spatial-tile) block.

    x_ref:   (T, HWt, Cin)   channels-last activation tile
    w_ref:   (Cin, Cout)     1x1x1 conv weight, already transposed (K, N)
    adj_ref: (T, T)          per-batch adjacency
    out_ref: (T, HWt, Cout)  channels-last output tile
    """
    x = x_ref[...]
    w = w_ref[...]
    adj = adj_ref[...]
    if compute_dtype is not None:
        x = x.astype(compute_dtype)
        w = w.astype(compute_dtype)
        adj = adj.astype(compute_dtype)

    # 1x1x1 conv == channel matmul on the MXU: (T*HWt, Cin) @ (Cin, Cout).
    # Output order 'tho' == dot_general order -> no transpose.
    support = jnp.einsum('thc,co->tho', x, w,
                         preferred_element_type=jnp.float32)    # (T, HWt, Cout) f32

    # Temporal/graph propagation: (T, T) @ (T, HWt*Cout) with lane-dense N.
    # Output order 'iho' == dot_general order -> no transpose.
    rhs = support if compute_dtype is None else support.astype(compute_dtype)
    out = jnp.einsum('ij,jho->iho', adj, rhs,
                     preferred_element_type=jnp.float32)        # (T, HWt, Cout) f32

    if skip:
        out = out + support
    out_ref[...] = out.astype(out_ref.dtype)


def _pick_hw_tile(hw, t, cin, cout, itemsize, budget_bytes=2 << 20):
    """Largest spatial tile whose double-buffered x+out tiles fit the budget."""
    def tiles_bytes(hwt):
        return 2 * t * hwt * (cin + cout) * itemsize

    if tiles_bytes(hw) <= budget_bytes:
        return hw                       # whole spatial extent fits: single tile
    best = 8
    for cand in range(8, hw, 8):        # keep the sublane dim a multiple of 8
        if hw % cand == 0 and tiles_bytes(cand) <= budget_bytes:
            best = cand
    return best


def gcn_forward(x, adj, weight, *, skip=True, compute_dtype=None,
                hw_tile=None, interpret=False):
    """x: (B, Cin, T, H, W), adj: (B, T, T), weight: (Cout, Cin)."""
    B, Cin, T, H, W = x.shape
    Cout, Cin_w = weight.shape
    assert Cin_w == Cin
    HW = H * W
    out_dtype = x.dtype

    # NCDHW -> channels-last (B, T, HW, Cin); single XLA transpose outside the
    # kernel. Weight pre-transposed to (K, N) = (Cin, Cout).
    x_cl = jnp.transpose(x.reshape(B, Cin, T, HW), (0, 2, 3, 1))
    w_t = weight.T
    adj_in = adj
    if compute_dtype is not None:       # halve input HBM traffic, bf16 MXU feed
        x_cl = x_cl.astype(compute_dtype)
        w_t = w_t.astype(compute_dtype)
        adj_in = adj_in.astype(compute_dtype)

    itemsize = jnp.dtype(compute_dtype or x.dtype).itemsize
    if hw_tile is None:
        hw_tile = _pick_hw_tile(HW, T, Cin, Cout, itemsize)
    n_hw_tiles = pl.cdiv(HW, hw_tile)

    flops = (2 * B * T * HW * Cin * Cout      # 1x1x1 conv
             + 2 * B * T * T * HW * Cout      # adjacency contraction
             + (B * T * HW * Cout if skip else 0))
    bytes_accessed = (x_cl.size * x_cl.dtype.itemsize
                      + w_t.size * w_t.dtype.itemsize
                      + adj_in.size * adj_in.dtype.itemsize
                      + B * T * HW * Cout * jnp.dtype(out_dtype).itemsize)

    kernel = functools.partial(gcn_kernel, skip=skip, compute_dtype=compute_dtype)

    out_cl = pl.pallas_call(
        kernel,
        out_shape=jax.ShapeDtypeStruct((B, T, HW, Cout), out_dtype),
        grid_spec=pltpu.PrefetchScalarGridSpec(
            num_scalar_prefetch=0,
            grid=(B, n_hw_tiles),
            in_specs=[
                pl.BlockSpec((None, T, hw_tile, Cin), lambda b, s: (b, 0, s, 0)),
                pl.BlockSpec((Cin, Cout), lambda b, s: (0, 0)),
                pl.BlockSpec((None, T, T), lambda b, s: (b, 0, 0)),
            ],
            out_specs=pl.BlockSpec((None, T, hw_tile, Cout),
                                   lambda b, s: (b, 0, s, 0)),
        ),
        compiler_params=pltpu.CompilerParams(
            dimension_semantics=("parallel", "parallel"),
            vmem_limit_bytes=32 * 1024 * 1024,
        ),
        cost_estimate=pl.CostEstimate(
            flops=flops, transcendentals=0, bytes_accessed=bytes_accessed),
        interpret=interpret,
    )(x_cl, w_t, adj_in)

    # channels-last (B, T, HW, Cout) -> NCDHW (B, Cout, T, H, W)
    return jnp.transpose(out_cl, (0, 3, 1, 2)).reshape(B, Cout, T, H, W)


def gcn_reference(x, adj, weight, *, skip=True):
    support = jnp.einsum('oc,bcthw->bothw', weight, x)
    out = jnp.einsum('bij,bcjhw->bcihw', adj, support)
    return out + support if skip else out


if __name__ == "__main__":
    # Small shapes consistent with the module's forward.
    B, Cin, T, H, W = 2, 4, 8, 4, 4
    Cout = Cin  # out_features defaults to in_features

    key = jax.random.PRNGKey(0)
    kx, kadj, kw = jax.random.split(key, 3)

    x = jax.random.normal(kx, (B, Cin, T, H, W), dtype=jnp.float32)
    adj = jax.random.uniform(kadj, (B, T, T), dtype=jnp.float32)

    # Deterministic weight init mirroring reset_parameters():
    # uniform(-stdv, stdv), stdv = 1/sqrt(in_features). Conv3d weight is
    # (Cout, Cin, 1, 1, 1); the 1x1x1 kernel collapses to (Cout, Cin).
    stdv = 1.0 / math.sqrt(Cin)
    weight = jax.random.uniform(kw, (Cout, Cin), dtype=jnp.float32,
                                minval=-stdv, maxval=stdv)

    ref = gcn_reference(x, adj, weight)

    # f32 path: exact-precision check against the reference.
    out = jax.block_until_ready(gcn_forward(x, adj, weight))
    assert out.shape == (B, Cout, T, H, W)
    assert jnp.allclose(out, ref, atol=1e-5, rtol=1e-5), "f32 mismatch vs reference"

    # bf16-matmul path (f32 accumulation): MXU-throughput / HBM-traffic option.
    out_bf16 = jax.block_until_ready(
        gcn_forward(x, adj, weight, compute_dtype=jnp.bfloat16))
    assert out_bf16.shape == (B, Cout, T, H, W)
    assert jnp.allclose(out_bf16, ref, atol=0.15, rtol=0.05), "bf16 mismatch vs reference"

    print("KERNEL_OK")
</pallas_src>

<mosaic_0001>
module attributes {stable_mosaic.version = 11 : i64} {
  func.func @gcn_kernel(%arg0: i32, %arg1: i32, %arg2: memref<1x8x16x4xf32, #tpu.memory_space<vmem>>, %arg3: memref<4x4xf32, #tpu.memory_space<vmem>>, %arg4: memref<1x8x8xf32, #tpu.memory_space<vmem>>, %arg5: memref<1x8x16x4xf32, #tpu.memory_space<vmem>>) attributes {dimension_semantics = [#tpu.dimension_semantics<parallel>, #tpu.dimension_semantics<parallel>], iteration_bounds = array<i64: 2, 1>, scalar_prefetch = 0 : i64, scratch_operands = 0 : i64, tpu.core_type = #tpu.core_type<tc>, window_params = [{transform_indices = @transform_0, window_bounds = array<i64: 1, 8, 16, 4>}, {pipeline_mode = #tpu.pipeline_mode<synchronous>, transform_indices = @transform_1, window_bounds = array<i64: 4, 4>}, {transform_indices = @transform_2, window_bounds = array<i64: 1, 8, 8>}, {transform_indices = @transform_3, window_bounds = array<i64: 1, 8, 16, 4>}]} {
    %c0 = arith.constant 0 : index
    %c0_0 = arith.constant 0 : index
    %c0_1 = arith.constant 0 : index
    %c0_2 = arith.constant 0 : index
    %0 = vector.load %arg2[%c0, %c0_0, %c0_1, %c0_2] : memref<1x8x16x4xf32, #tpu.memory_space<vmem>>, vector<1x8x16x4xf32>
    %1 = vector.shape_cast %0 : vector<1x8x16x4xf32> to vector<8x16x4xf32>
    %c0_3 = arith.constant 0 : index
    %c0_4 = arith.constant 0 : index
    %2 = vector.load %arg3[%c0_3, %c0_4] : memref<4x4xf32, #tpu.memory_space<vmem>>, vector<4x4xf32>
    %c0_5 = arith.constant 0 : index
    %c0_6 = arith.constant 0 : index
    %c0_7 = arith.constant 0 : index
    %3 = vector.load %arg4[%c0_5, %c0_6, %c0_7] : memref<1x8x8xf32, #tpu.memory_space<vmem>>, vector<1x8x8xf32>
    %4 = vector.shape_cast %3 : vector<1x8x8xf32> to vector<8x8xf32>
    "tpu.trace_start"() <{level = 10 : i32, message = "thc,co->tho"}> : () -> ()
    %cst = arith.constant dense<0.000000e+00> : vector<8x16x4xf32>
    %5 = tpu.matmul %1, %2, %cst {dimension_numbers = #tpu.dot_dimension_numbers<[2], [0], [0, 1], [1], [0, 0, 0, 1, 1, 1], [], []>} : vector<8x16x4xf32>, vector<4x4xf32>, vector<8x16x4xf32> -> vector<8x16x4xf32>
    "tpu.trace_stop"() : () -> ()
    "tpu.trace_start"() <{level = 10 : i32, message = "ij,jho->iho"}> : () -> ()
    %cst_8 = arith.constant dense<0.000000e+00> : vector<8x16x4xf32>
    %6 = tpu.matmul %4, %5, %cst_8 {dimension_numbers = #tpu.dot_dimension_numbers<[1], [0], [0], [1, 2], [0, 0, 1, 1, 1, 2], [], []>} : vector<8x8xf32>, vector<8x16x4xf32>, vector<8x16x4xf32> -> vector<8x16x4xf32>
    "tpu.trace_stop"() : () -> ()
    %7 = arith.addf %6, %5 : vector<8x16x4xf32>
    %c0_9 = arith.constant 0 : index
    %c0_10 = arith.constant 0 : index
    %c0_11 = arith.constant 0 : index
    %c0_12 = arith.constant 0 : index
    %8 = vector.load %arg5[%c0_9, %c0_10, %c0_11, %c0_12] : memref<1x8x16x4xf32, #tpu.memory_space<vmem>>, vector<1x8x16x4xf32>
    %9 = vector.shape_cast %8 : vector<1x8x16x4xf32> to vector<8x16x4xf32>
    %10 = vector.shape_cast %7 : vector<8x16x4xf32> to vector<1x8x16x4xf32>
    tpu.vector_store %arg5[%c0_9, %c0_10, %c0_11, %c0_12], %10 {strides = array<i32>} : memref<1x8x16x4xf32, #tpu.memory_space<vmem>>, vector<1x8x16x4xf32>,
    return
  }
  func.func @transform_0(%arg0: i32, %arg1: i32) -> (i32, i32, i32, i32) {
    %c0_i32 = arith.constant 0 : i32
    %c0_i32_0 = arith.constant 0 : i32
    %c0_i32_1 = arith.constant 0 : i32
    return %arg0, %c0_i32, %arg1, %c0_i32_0 : i32, i32, i32, i32
  }
  func.func @transform_1(%arg0: i32, %arg1: i32) -> (i32, i32) {
    %c0_i32 = arith.constant 0 : i32
    %c0_i32_0 = arith.constant 0 : i32
    %c0_i32_1 = arith.constant 0 : i32
    return %c0_i32, %c0_i32_0 : i32, i32
  }
  func.func @transform_2(%arg0: i32, %arg1: i32) -> (i32, i32, i32) {
    %c0_i32 = arith.constant 0 : i32
    %c0_i32_0 = arith.constant 0 : i32
    %c0_i32_1 = arith.constant 0 : i32
    return %arg0, %c0_i32, %c0_i32_0 : i32, i32, i32
  }
  func.func @transform_3(%arg0: i32, %arg1: i32) -> (i32, i32, i32, i32) {
    %c0_i32 = arith.constant 0 : i32
    %c0_i32_0 = arith.constant 0 : i32
    %c0_i32_1 = arith.constant 0 : i32
    return %arg0, %c0_i32, %arg1, %c0_i32_0 : i32, i32, i32, i32
  }
}

</mosaic_0001>

<bundles_post_ra>
// kernel: tpu_custom_call.1
= control target key start
LH: loop header
LB: loop body
LE: loop exit
PB: predicated region body
PF: predicated region fallthrough
CT: control target
= control target key end

     0   :  { %s1530_s12 = smov 0   ;;  %s1532_s13 = smov 0   ;;  %s1732_s0 = inlined_call_operand.vmem [shape: f32[2,8,16,4], index: 0, kind: input, shape index: {}]   ;;  %s1733_s1 = inlined_call_operand.vmem [shape: f32[4,4], index: 1, kind: input, shape index: {}]   ;;  %s1734_s2 = inlined_call_operand.vmem [shape: f32[2,8,8], index: 2, kind: input, shape index: {}]   ;;  %s1735_s3 = inlined_call_operand.vmem [shape: f32[2,8,16,4], index: 3, kind: output, shape index: {}]  }
   0x1   :  { %s1534_s14 = smov 0  }
   0x2 LB: > { %s25_s15 = sadd.s32 1, %s1470_s13  ;;  %p1314_p0 = scmp.ge.s32.totalorder %s1474_s14, 1  ;;  %s1474_s14 = sphi %s1534_s14, %s13_s14   ;;  %s1470_s13 = sphi %s1532_s13, %s1737_s13   ;;  %s1466_s12 = sphi %s1530_s12, %s1736_s12  }
   0x3   : > { %p27_p1 = scmp.ge.s32.totalorder %s25_s15, 2  ;;  %p167_p2 = scmp.lt.s32.totalorder %s1474_s14, 3 }
   0x5   : > { %s1739_s15 = smov (%p27_p1, %s25_s15), 0  ;;  %p168_p3 = pnand %p1314_p0, %p167_p2 }
   0x6   : > { %v243_v0 = vld [vmem:[%s1733_s1] sm:$0xf] (!%p168_p3)  ;;  %vm294_vm0 = vcmask (!%p168_p3), 1043456   ;;  %p204_p4 = scmp.lt.s32.totalorder (!%p168_p3), %s1466_s12, 1  ;;  %vm245_vm1 = vcmask (!%p168_p3), 31744   ;;  %v448_v21 = vlaneseq (!%p168_p3)  ;;  %s1478_s22 = smov (!%p168_p3), 36  }
   0x7   : > { %171 = sbr.rel (%p168_p3) target bundleno = 774 (0x306), region = 32  ;;  %1361 = vmatprep.subr.msk.mxu0 (!%p168_p3), %vm294_vm0, %v243_v0  ;;  %1392 = vmatprep.subr.msk.mxu1 (!%p168_p3), %vm294_vm0, %v243_v0  ;;  %v1476_v19 = vmov (!%p168_p3), 1983009808   ;;  %v1477_v28 = vmov (!%p168_p3), 1934713408   ;;  %s1479_s23 = smov (!%p168_p3), 32  }
   0x8   : > { %1362 = vmatpush3.msk.msra.mxu0 (!%p168_p3), %vm294_vm0, %v243_v0  ;;  %1393 = vmatpush3.msk.msra.mxu1 (!%p168_p3), %vm294_vm0, %v243_v0  ;;  %v446_v20 = vunpack.c.l.s4 (!%p168_p3), %v1476_v19  ;;  %v449_v27 = vshrl.u32 (!%p168_p3), %v448_v21, 7  ;;  %v510_v29 = vunpack.c.l.s4 (!%p168_p3), %v1477_v28  ;;  %s1480_s24 = smov (!%p168_p3), 44   ;;  %s1481_s25 = smov (!%p168_p3), 40   ;;  %vm1489_vm2 = vmmov (!%p168_p3), 0  }
   0x9   : > { %s1482_s26 = smov (!%p168_p3), 12   ;;  %s1483_s27 = smov (!%p168_p3), 4   ;;  %vm776_vm3 = vcmask (!%p168_p3), 64512   ;;  %vm778_vm4 = vcmask (!%p168_p3), 97280   ;;  %vm780_vm5 = vcmask (!%p168_p3), 130048   ;;  %vm782_vm6 = vcmask (!%p168_p3), 162816  }
   0xa   : > { %v447_v26 = vunpack.c.0.s8 (!%p168_p3), %v446_v20  ;;  %v511_v35 = vunpack.c.0.s8 (!%p168_p3), %v510_v29  ;;  %s1484_s28 = smov (!%p168_p3), 16   ;;  %s1485_s29 = smov (!%p168_p3), 8   ;;  %vm784_vm7 = vcmask (!%p168_p3), 195584   ;;  %vm786_vm8 = vcmask (!%p168_p3), 228352  }
   0xb   : > { %s1486_s30 = smov (!%p168_p3), 24   ;;  %s1487_s4 = smov (!%p168_p3), 20   ;;  %vm788_vm9 = vcmask (!%p168_p3), 261120   ;;  %vm790_vm10 = vcmask (!%p168_p3), 293888   ;;  %vm792_vm11 = vcmask (!%p168_p3), 326656   ;;  %vm794_vm12 = vcmask (!%p168_p3), 359424  }
   0xc   : > { %v1593_v33 = vsub.s32 (!%p168_p3), %v447_v26, %v449_v27  ;;  %v1595_v47 = vsub.s32 (!%p168_p3), %v511_v35, %v449_v27  ;;  %s1490_s5 = smov (!%p168_p3), 48   ;;  %s1491_s6 = smov (!%p168_p3), 28   ;;  %vm796_vm13 = vcmask (!%p168_p3), 392192   ;;  %vm798_vm14 = vcmask (!%p168_p3), 424960  }
   0xd   : > { %s1492_s7 = smov (!%p168_p3), 56   ;;  %s1493_s8 = smov (!%p168_p3), 52   ;;  %vm800_vm15 = vcmask (!%p168_p3), 457728   ;;  %vm802_vm0 = vcmask (!%p168_p3), 490496  }
   0xe   : > { %s1741_s12 = smov (!%p204_p4, %s1466_s12), 1  ;;  %s1494_s9 = smov 60  }
   0xf   : > { %s1340_s18 = sshll.u32 %s1741_s12, 7  ;;  %s1317_s10 = sshll.u32 %s1741_s12, 3 }
  0x10   : > { %s1559_s21 = scalar_lea.vmem %s1732_s0, %s1340_s18  ;;  %s216_s17 = scalar_lea.vmem %s1734_s2, %s1317_s10 }
  0x11   : > { %v227_v1 = vld [vmem:[%s1559_s21] sm:$0xff]  ;;  %v237_v2 = vld [vmem:[%s1559_s21 + $0x50] sm:$0xff]  ;;  %v228_v3 = vld [vmem:[%s1559_s21 + $0x8] sm:$0xff]  ;;  %s1495_s19 = smov 120   ;;  %s1496_s20 = smov 124  }
  0x12   : > { %1363 = vmatprep.mubr.msk.f32.mxu0 %vm245_vm1, %v227_v1  ;;  %1378 = vmatprep.mubr.msk.f32.mxu1 %vm245_vm1, %v237_v2  ;;  %v238_v4 = vld [vmem:[%s1559_s21 + $0x58] sm:$0xff]  ;;  %v229_v5 = vld [vmem:[%s1559_s21 + $0x10] sm:$0xff]  ;;  %v239_v6 = vld [vmem:[%s1559_s21 + $0x60] sm:$0xff] }
  0x13   : > { %1364 = vmatmul.mubr.msk.f32.vlgmr.msra.gmra.mrb[0].mxu0 %vm245_vm1, %v228_v3  ;;  %1379 = vmatmul.mubr.msk.f32.vlgmr.msra.gmra.mrb[0].mxu1 %vm245_vm1, %v238_v4  ;;  %v230_v7 = vld [vmem:[%s1559_s21 + $0x18] sm:$0xff]  ;;  %v240_v8 = vld [vmem:[%s1559_s21 + $0x68] sm:$0xff]  ;;  %v231_v9 = vld [vmem:[%s1559_s21 + $0x20] sm:$0xff] }
  0x14   : > { %1366 = vmatprep.mubr.msk.f32.mxu0 %vm245_vm1, %v229_v5  ;;  %1381 = vmatprep.mubr.msk.f32.mxu1 %vm245_vm1, %v239_v6  ;;  %v241_v10 = vld [vmem:[%s1559_s21 + $0x70] sm:$0xff]  ;;  %v232_v11 = vld [vmem:[%s1559_s21 + $0x28] sm:$0xff]  ;;  %v242_v12 = vld [vmem:[%s1559_s21 + $0x78] sm:$0xff] }
  0x15   : > { %v233_v13 = vld [vmem:[%s1559_s21 + $0x30] sm:$0xff]  ;;  %v234_v14 = vld [vmem:[%s1559_s21 + $0x38] sm:$0xff]  ;;  %v235_v15 = vld [vmem:[%s1559_s21 + $0x40] sm:$0xff] }
  0x16   : > { %v236_v16 = vld [vmem:[%s1559_s21 + $0x48] sm:$0xff]  ;;  %s1497_s21 = smov 112  }
  0x17   : > { %1367 = vmatmul.mubr.msk.f32.gmra.mrb[2].mxu0 %vm245_vm1, %v230_v7  ;;  %1382 = vmatmul.mubr.msk.f32.gmra.mrb[2].mxu1 %vm245_vm1, %v240_v8 }
  0x18   : > { %1369 = vmatprep.mubr.msk.f32.mxu0 %vm245_vm1, %v231_v9  ;;  %1384 = vmatprep.mubr.msk.f32.mxu1 %vm245_vm1, %v241_v10 }
  0x1b   : > { %1370 = vmatmul.mubr.msk.f32.gmra.mrb[4].mxu0 %vm245_vm1, %v232_v11  ;;  %1385 = vmatmul.mubr.msk.f32.gmra.mrb[4].mxu1 %vm245_vm1, %v242_v12 }
  0x1c   : > { %1372 = vmatprep.mubr.msk.f32.mxu0 %vm245_vm1, %v233_v13 }
  0x1f   : > { %1373 = vmatmul.mubr.msk.f32.gmra.mrb[6].mxu0 %vm245_vm1, %v234_v14 }
  0x20   : > { %1375 = vmatprep.mubr.msk.f32.mxu0 %vm245_vm1, %v235_v15 }
  0x23   : > { %1376 = vmatmul.mubr.msk.f32.gmra.mrb[8].mxu0 %vm245_vm1, %v236_v16 }
  0xe6   : > { %v1365_v17 = vpop.f32.mrb[0].mxu0  ;;  %v1380_v18 = vpop.f32.mrb[0].mxu1 }
  0xe7   : > { %v364_v22 = vpop.f32.mrb[1].mxu0  ;;  %v414_v23 = vpop.f32.mrb[1].mxu1 }
  0xea   : > { %v1368_v24 = vpop.f32.mrb[2].mxu0  ;;  %v1383_v25 = vpop.f32.mrb[2].mxu1 }
  0xeb   : > { %v374_v30 = vpop.f32.mrb[3].mxu0  ;;  %v424_v31 = vpop.f32.mrb[3].mxu1 }
  0xee   : > { %v1371_v32 = vpop.f32.mrb[4].mxu0  ;;  %v1386_v34 = vpop.f32.mrb[4].mxu1 }
  0xef   : > { %v579_v36 = vcombine.low %v1365_v17, %v1371_v32  ;;  %v580_v37 = vcombine.high %v1365_v17, %v1371_v32  ;;  %v627_v38 = vcombine.low %v1380_v18, %v1386_v34  ;;  %v628_v39 = vcombine.high %v1380_v18, %v1386_v34  ;;  %v384_v40 = vpop.f32.mrb[5].mxu0  ;;  %v434_v41 = vpop.f32.mrb[5].mxu1 }
  0xf0   : > { %v443_v42 = vcombine.low %v364_v22, %v384_v40  ;;  %v444_v43 = vcombine.high %v364_v22, %v384_v40  ;;  %v491_v44 = vcombine.low %v414_v23, %v434_v41  ;;  %v492_v45 = vcombine.high %v414_v23, %v434_v41 }
  0xf1   : > { %v587_v48 = vrot.slane %v579_v36, %v1593_v33  ;;  %v1599_v49 = vrot.slane %v580_v37, %v1593_v33  ;;  %v635_v53 = vrot.slane %v627_v38, %v1593_v33  ;;  %v1603_v54 = vrot.slane %v628_v39, %v1593_v33 }
  0xf2   : > { %v1374_v46 = vpop.f32.mrb[6].mxu0  ;;  %v451_v57 = vrot.slane %v443_v42, %v1593_v33  ;;  %v458_v58 = vrot.slane %v444_v43, %v1593_v33  ;;  %v499_v61 = vrot.slane %v491_v44, %v1593_v33  ;;  %v506_v62 = vrot.slane %v492_v45, %v1593_v33 }
  0xf3   : > { %v595_v50 = vcombine.low %v1368_v24, %v1374_v46  ;;  %v596_v51 = vcombine.high %v1368_v24, %v1374_v46  ;;  %v394_v52 = vpop.f32.mrb[7].mxu0 }
  0xf4   : > { %v459_v55 = vcombine.low %v374_v30, %v394_v52  ;;  %v460_v56 = vcombine.high %v374_v30, %v394_v52 }
  0xf5   : > { %v603_v59 = vrot.slane %v595_v50, %v1593_v33  ;;  %v610_v60 = vrot.slane %v596_v51, %v1593_v33 }
  0xf6   : > { %v467_v63 = vrot.slane %v459_v55, %v1593_v33  ;;  %v474_v0 = vrot.slane %v460_v56, %v1593_v33  ;;  %v1377_v1 = vpop.f32.mrb[8].mxu0 }
  0xf7   : > { %v644_v2 = vcombine.high %v587_v48, %v603_v59  ;;  %v659_v3 = vcombine.low %v1599_v49, %v610_v60  ;;  %v660_v4 = vcombine.high %v1599_v49, %v610_v60  ;;  %v611_v5 = vcombine.low %v1377_v1, %v1383_v25  ;;  %v404_v6 = vpop.f32.mrb[9].mxu0 }
  0xf8   : > { %v507_v7 = vcombine.low %v451_v57, %v467_v63  ;;  %v508_v8 = vcombine.high %v451_v57, %v467_v63  ;;  %v523_v9 = vcombine.low %v458_v58, %v474_v0  ;;  %v524_v10 = vcombine.high %v458_v58, %v474_v0 }
  0xf9   : > { %v612_v11 = vcombine.high %v1377_v1, %v1383_v25  ;;  %v619_v12 = vrot.slane %v611_v5, %v1593_v33  ;;  %v475_v13 = vcombine.low %v404_v6, %v424_v31  ;;  %v476_v14 = vcombine.high %v404_v6, %v424_v31 }
  0xfa   : > { %v643_v15 = vcombine.low %v587_v48, %v603_v59  ;;  %v658_v16 = vrot.slane %v644_v2, %v1595_v47  ;;  %v522_v17 = vrot.slane %v508_v8, %v1595_v47  ;;  %v1619_v18 = vrot.slane %v507_v7, %v1595_v47 }
  0xfb   : > { %v626_v19 = vrot.slane %v612_v11, %v1593_v33  ;;  %v676_v20 = vcombine.high %v619_v12, %v635_v53  ;;  %v483_v21 = vrot.slane %v475_v13, %v1593_v33  ;;  %v490_v22 = vrot.slane %v476_v14, %v1593_v33 }
  0xfc   : > { %v651_v23 = vrot.slane %v643_v15, %v1595_v47  ;;  %v675_v24 = vcombine.low %v619_v12, %v635_v53  ;;  %v531_v25 = vrot.slane %v523_v9, %v1595_v47  ;;  %v538_v26 = vrot.slane %v524_v10, %v1595_v47 }
  0xfd   : > { %v691_v27 = vcombine.low %v626_v19, %v1603_v54  ;;  %v692_v28 = vcombine.high %v626_v19, %v1603_v54  ;;  %v539_v29 = vcombine.low %v483_v21, %v499_v61  ;;  %v540_v30 = vcombine.high %v483_v21, %v499_v61 }
  0xfe   : > { %v555_v31 = vcombine.low %v490_v22, %v506_v62  ;;  %v556_v32 = vcombine.high %v490_v22, %v506_v62  ;;  %v683_v34 = vrot.slane %v675_v24, %v1595_v47  ;;  %v690_v35 = vrot.slane %v676_v20, %v1595_v47 }
  0xff   : > { %v554_v36 = vrot.slane %v540_v30, %v1595_v47  ;;  %v1633_v37 = vrot.slane %v539_v29, %v1595_v47  ;;  %v667_v38 = vrot.slane %v659_v3, %v1595_v47  ;;  %v699_v39 = vrot.slane %v691_v27, %v1595_v47  ;;  %v244_v27 = vld [vmem:[%s216_s17] sm:$0xff] }
 0x100   : > { %v708_v40 = vcombine.high %v651_v23, %v683_v34  ;;  %v707_v41 = vcombine.low %v651_v23, %v683_v34  ;;  %v710_v42 = vcombine.high %v658_v16, %v690_v35  ;;  %v709_v43 = vcombine.low %v658_v16, %v690_v35 }
 0x101   : > { %v574_v44 = vcombine.high %v522_v17, %v554_v36  ;;  %v572_v45 = vcombine.high %v1619_v18, %v1633_v37  ;;  %v563_v46 = vrot.slane %v555_v31, %v1595_v47  ;;  %v573_v48 = vcombine.low %v522_v17, %v554_v36 }
 0x102   : > { %748 = vrot.lane.b32.xlu0 %v708_v40, %s1478_s22  ;;  %744 = vrot.lane.b32.xlu1 %v707_v41, %s1479_s23  ;;  %v570_v49 = vrot.slane %v556_v32, %v1595_v47  ;;  %v711_v50 = vcombine.low %v667_v38, %v699_v39  ;;  %v674_v51 = vrot.slane %v660_v4, %v1595_v47  ;;  %v1488_v61 = vmov 0.0   ;;  %s1498_s22 = smov 116   ;;  %s1499_s23 = smov 104  }
 0x103   : > { %v575_v52 = vcombine.low %v531_v25, %v563_v46  ;;  %v576_v53 = vcombine.high %v531_v25, %v563_v46  ;;  %v706_v54 = vrot.slane %v692_v28, %v1595_v47  ;;  %v712_v55 = vcombine.high %v667_v38, %v699_v39  ;;  %1387 = vmatprep.subr.mxu1 %v1488_v61 }
 0x104   : > { %v577_v56 = vcombine.low %v538_v26, %v570_v49  ;;  %v578_v57 = vcombine.high %v538_v26, %v570_v49  ;;  %v571_v58 = vcombine.low %v1619_v18, %v1633_v37  ;;  %1389 = vmatprep.mubr.msk.f32.mxu1 %vm1489_vm2, %v1488_v61 }
 0x105   : > { %v713_v59 = vcombine.low %v674_v51, %v706_v54  ;;  %v714_v60 = vcombine.high %v674_v51, %v706_v54 }
 0x106   : > { %756 = vrot.lane.b32.xlu0 %v710_v42, %s1480_s24  ;;  %752 = vrot.lane.b32.xlu1 %v709_v43, %s1481_s25  ;;  %s1500_s24 = smov 108   ;;  %s1501_s25 = smov 96  }
 0x10a   : > { %724 = vrot.lane.b32.xlu1 %v574_v44, %s1482_s26  ;;  %716 = vrot.lane.b32.xlu0 %v572_v45, %s1483_s27  ;;  %s1502_s26 = smov 100   ;;  %s1503_s27 = smov 88  }
 0x10e   : > { %728 = vrot.lane.b32.xlu1 %v575_v52, %s1484_s28  ;;  %720 = vrot.lane.b32.xlu0 %v573_v48, %s1485_s29  ;;  %s1504_s28 = smov 92   ;;  %s1505_s29 = smov 80  }
 0x112   : > { %736 = vrot.lane.b32.xlu1 %v577_v56, %s1486_s30  ;;  %732 = vrot.lane.b32.xlu0 %v576_v53, %s1487_s4  ;;  %s1506_s30 = smov 84   ;;  %s1507_s4 = smov 72  }
 0x116   : > { %760 = vrot.lane.b32.xlu1 %v711_v50, %s1490_s5  ;;  %740 = vrot.lane.b32.xlu0 %v578_v57, %s1491_s6  ;;  %s1508_s5 = smov 76   ;;  %s1509_s6 = smov 68  }
 0x11a   : > { %768 = vrot.lane.b32.xlu1 %v713_v59, %s1492_s7  ;;  %764 = vrot.lane.b32.xlu0 %v712_v55, %s1493_s8 }
 0x11e   : > { %772 = vrot.lane.b32.xlu0 %v714_v60, %s1494_s9  ;;  %s1671_s9 = scalar_lea.vmem %s1735_s3, %s1340_s18 }
 0x174   : > { %v749_v62 = vpop.permute.xlu0 %748  ;;  %v745_v63 = vpop.permute.xlu1 %744 }
 0x178   : > { %v757_v0 = vpop.permute.xlu0 %756  ;;  %v753_v1 = vpop.permute.xlu1 %752 }
 0x17c   : > { %v725_v2 = vpop.permute.xlu1 %724  ;;  %v717_v3 = vpop.permute.xlu0 %716 }
 0x17d   : > { %v775_v4 = vsel %vm245_vm1, %v571_v58, %v717_v3 }
 0x180   : > { %v729_v5 = vpop.permute.xlu1 %728  ;;  %v721_v6 = vpop.permute.xlu0 %720 }
 0x181   : > { %v777_v7 = vsel %vm776_vm3, %v775_v4, %v721_v6 }
 0x182   : > { %v779_v8 = vsel %vm778_vm4, %v777_v7, %v725_v2 }
 0x183   : > { %v781_v9 = vsel %vm780_vm5, %v779_v8, %v729_v5 }
 0x184   : > { %v737_v10 = vpop.permute.xlu1 %736  ;;  %v733_v11 = vpop.permute.xlu0 %732 }
 0x185   : > { %v783_v12 = vsel %vm782_vm6, %v781_v9, %v733_v11 }
 0x186   : > { %v785_v14 = vsel %vm784_vm7, %v783_v12, %v737_v10 }
 0x188   : > { %v741_v13 = vpop.permute.xlu0 %740  ;;  %v761_v15 = vpop.permute.xlu1 %760 }
 0x189   : > { %v787_v16 = vsel %vm786_vm8, %v785_v14, %v741_v13 }
 0x18a   : > { %v789_v17 = vsel %vm788_vm9, %v787_v16, %v745_v63 }
 0x18b   : > { %v791_v18 = vsel %vm790_vm10, %v789_v17, %v749_v62 }
 0x18c   : > { %v765_v19 = vpop.permute.xlu0 %764  ;;  %v793_v20 = vsel %vm792_vm11, %v791_v18, %v753_v1  ;;  %v769_v23 = vpop.permute.xlu1 %768 }
 0x18d   : > { %v795_v21 = vsel %vm794_vm12, %v793_v20, %v757_v0 }
 0x18e   : > { %v797_v22 = vsel %vm796_vm13, %v795_v21, %v761_v15 }
 0x18f   : > { %v799_v24 = vsel %vm798_vm14, %v797_v22, %v765_v19 }
 0x190   : > { %v773_v25 = vpop.permute.xlu0 %772  ;;  %v801_v26 = vsel %vm800_vm15, %v799_v24, %v769_v23 }
 0x191   : > { %v803_v28 = vsel %vm802_vm0, %v801_v26, %v773_v25 }
 0x192   : > { %1388 = vmatpush3.msra.mxu1 %v803_v28 }
 0x193   : > { %1390 = vmatmul.mubr.msk.f32.vlgmr.msra.gmra.mrb[6].mxu1 %vm776_vm3, %v244_v27 }
 0x266   : > { %v873_v29 = vpop.f32.mrb[6].mxu1 }
 0x267   : > { %v874_v30 = vadd.f32 %v873_v29, %v803_v28  ;;  %v1391_v31 = vpop.f32.mrb[7].mxu1 }
 0x269   : > { %881 = vrot.lane.b32.xlu0 %v874_v30, %s1495_s19  ;;  %878 = vrot.lane.b32.xlu1 %v874_v30, %s1496_s20 }
 0x26d   : > { %887 = vrot.lane.b32.xlu0 %v874_v30, %s1497_s21  ;;  %884 = vrot.lane.b32.xlu1 %v874_v30, %s1498_s22 }
 0x271   : > { %893 = vrot.lane.b32.xlu0 %v874_v30, %s1499_s23  ;;  %890 = vrot.lane.b32.xlu1 %v874_v30, %s1500_s24 }
 0x275   : > { %899 = vrot.lane.b32.xlu0 %v874_v30, %s1501_s25  ;;  %896 = vrot.lane.b32.xlu1 %v874_v30, %s1502_s26 }
 0x279   : > { %905 = vrot.lane.b32.xlu0 %v874_v30, %s1503_s27  ;;  %902 = vrot.lane.b32.xlu1 %v874_v30, %s1504_s28 }
 0x27d   : > { %911 = vrot.lane.b32.xlu0 %v874_v30, %s1505_s29  ;;  %908 = vrot.lane.b32.xlu1 %v874_v30, %s1506_s30 }
 0x281   : > { %917 = vrot.lane.b32.xlu0 %v874_v30, %s1507_s4  ;;  %914 = vrot.lane.b32.xlu1 %v874_v30, %s1508_s5 }
 0x285   : > { %920 = vrot.lane.b32.xlu1 %v874_v30, %s1509_s6 }
 0x2db   : > { %v882_v32 = vpop.permute.xlu0 %881  ;;  %v879_v34 = vpop.permute.xlu1 %878 }
 0x2dc   : > { %v923_v38 = vcombine.low %v874_v30, %v882_v32  ;;  %v924_v42 = vcombine.high %v874_v30, %v882_v32 }
 0x2de   : > { %v931_v46 = vrot.slane %v923_v38, %v1593_v33  ;;  %v938_v53 = vrot.slane %v924_v42, %v1593_v33 }
 0x2df   : > { %v888_v35 = vpop.permute.xlu0 %887  ;;  %v885_v36 = vpop.permute.xlu1 %884 }
 0x2e0   : > { %v939_v37 = vcombine.low %v879_v34, %v885_v36  ;;  %v940_v39 = vcombine.high %v879_v34, %v885_v36 }
 0x2e2   : > { %v947_v43 = vrot.slane %v939_v37, %v1593_v33  ;;  %v954_v48 = vrot.slane %v940_v39, %v1593_v33 }
 0x2e3   : > { %v894_v40 = vpop.permute.xlu0 %893  ;;  %v891_v41 = vpop.permute.xlu1 %890 }
 0x2e4   : > { %v955_v44 = vcombine.low %v888_v35, %v894_v40  ;;  %v956_v45 = vcombine.high %v888_v35, %v894_v40  ;;  %v987_v54 = vcombine.low %v931_v46, %v947_v43  ;;  %v988_v55 = vcombine.high %v931_v46, %v947_v43 }
 0x2e5   : > { %v1003_v60 = vcombine.low %v938_v53, %v954_v48  ;;  %v1004_v61 = vcombine.high %v938_v53, %v954_v48 }
 0x2e6   : > { %v963_v56 = vrot.slane %v955_v44, %v1593_v33  ;;  %v970_v57 = vrot.slane %v956_v45, %v1593_v33  ;;  %v995_v4 = vrot.slane %v987_v54, %v1595_v47  ;;  %v1002_v5 = vrot.slane %v988_v55, %v1595_v47 }
 0x2e7   : > { %v900_v49 = vpop.permute.xlu0 %899  ;;  %v897_v50 = vpop.permute.xlu1 %896  ;;  %v1011_v10 = vrot.slane %v1003_v60, %v1595_v47  ;;  %v1018_v11 = vrot.slane %v1004_v61, %v1595_v47 }
 0x2e8   : > { %v971_v51 = vcombine.low %v891_v41, %v897_v50  ;;  %v972_v52 = vcombine.high %v891_v41, %v897_v50 }
 0x2ea   : > { %v979_v58 = vrot.slane %v971_v51, %v1593_v33  ;;  %v986_v59 = vrot.slane %v972_v52, %v1593_v33 }
 0x2eb   : > { %v906_v62 = vpop.permute.xlu0 %905  ;;  %v903_v63 = vpop.permute.xlu1 %902 }
 0x2ec   : > { %v1019_v0 = vcombine.low %v963_v56, %v979_v58  ;;  %v1020_v1 = vcombine.high %v963_v56, %v979_v58  ;;  %v1035_v2 = vcombine.low %v970_v57, %v986_v59  ;;  %v1036_v3 = vcombine.high %v970_v57, %v986_v59 }
 0x2ed   : > { %v1059_v24 = vcombine.low %v900_v49, %v906_v62  ;;  %v1060_v27 = vcombine.high %v900_v49, %v906_v62 }
 0x2ee   : > { %v1027_v6 = vrot.slane %v1019_v0, %v1595_v47  ;;  %v1034_v7 = vrot.slane %v1020_v1, %v1595_v47  ;;  %v1043_v8 = vrot.slane %v1035_v2, %v1595_v47  ;;  %v1050_v9 = vrot.slane %v1036_v3, %v1595_v47 }
 0x2ef   : > { %v912_v12 = vpop.permute.xlu0 %911  ;;  %v909_v13 = vpop.permute.xlu1 %908  ;;  %v1067_v32 = vrot.slane %v1059_v24, %v1593_v33  ;;  %v1074_v37 = vrot.slane %v1060_v27, %v1593_v33 }
 0x2f0   : > { %v1051_v14 = vcombine.low %v995_v4, %v1027_v6  ;;  %v1052_v15 = vcombine.high %v995_v4, %v1027_v6  ;;  %v1053_v16 = vcombine.low %v1002_v5, %v1034_v7  ;;  %v1054_v17 = vcombine.high %v1002_v5, %v1034_v7 }
 0x2f1   : > { %v1055_v18 = vcombine.low %v1011_v10, %v1043_v8  ;;  %v1056_v19 = vcombine.high %v1011_v10, %v1043_v8  ;;  %v1057_v20 = vcombine.low %v1018_v11, %v1050_v9  ;;  %v1058_v21 = vcombine.high %v1018_v11, %v1050_v9 }
 0x2f2   : > { %1195 = vst.msk [vmem:[%s1671_s9] sm:$0xff] %vm245_vm1, %v1051_v14  ;;  %1197 = vst.msk [vmem:[%s1671_s9 + $0x10] sm:$0xff] %vm245_vm1, %v1052_v15  ;;  %v1075_v22 = vcombine.low %v903_v63, %v909_v13  ;;  %v1076_v25 = vcombine.high %v903_v63, %v909_v13 }
 0x2f3   : > { %1199 = vst.msk [vmem:[%s1671_s9 + $0x20] sm:$0xff] %vm245_vm1, %v1053_v16  ;;  %1201 = vst.msk [vmem:[%s1671_s9 + $0x30] sm:$0xff] %vm245_vm1, %v1054_v17  ;;  %v915_v23 = vpop.permute.xlu1 %914  ;;  %v918_v26 = vpop.permute.xlu0 %917 }
 0x2f4   : > { %1203 = vst.msk [vmem:[%s1671_s9 + $0x40] sm:$0xff] %vm245_vm1, %v1055_v18  ;;  %1205 = vst.msk [vmem:[%s1671_s9 + $0x50] sm:$0xff] %vm245_vm1, %v1056_v19  ;;  %v1083_v28 = vrot.slane %v1075_v22, %v1593_v33  ;;  %v1091_v29 = vcombine.low %v912_v12, %v918_v26  ;;  %v1092_v30 = vcombine.high %v912_v12, %v918_v26 }
 0x2f5   : > { %1207 = vst.msk [vmem:[%s1671_s9 + $0x60] sm:$0xff] %vm245_vm1, %v1057_v20  ;;  %1209 = vst.msk [vmem:[%s1671_s9 + $0x70] sm:$0xff] %vm245_vm1, %v1058_v21  ;;  %v1090_v34 = vrot.slane %v1076_v25, %v1593_v33 }
 0x2f6   : > { %v1123_v38 = vcombine.low %v1067_v32, %v1083_v28  ;;  %v1124_v39 = vcombine.high %v1067_v32, %v1083_v28  ;;  %v1099_v40 = vrot.slane %v1091_v29, %v1593_v33  ;;  %v1106_v41 = vrot.slane %v1092_v30, %v1593_v33 }
 0x2f7   : > { %v921_v31 = vpop.permute.xlu1 %920  ;;  %v1139_v44 = vcombine.low %v1074_v37, %v1090_v34  ;;  %v1140_v45 = vcombine.high %v1074_v37, %v1090_v34 }
 0x2f8   : > { %v1107_v35 = vcombine.low %v915_v23, %v921_v31  ;;  %v1108_v36 = vcombine.high %v915_v23, %v921_v31  ;;  %v1131_v51 = vrot.slane %v1123_v38, %v1595_v47  ;;  %v1138_v52 = vrot.slane %v1124_v39, %v1595_v47 }
 0x2f9   : > { %v1147_v56 = vrot.slane %v1139_v44, %v1595_v47  ;;  %v1154_v57 = vrot.slane %v1140_v45, %v1595_v47 }
 0x2fa   : > { %v1115_v42 = vrot.slane %v1107_v35, %v1593_v33  ;;  %v1122_v43 = vrot.slane %v1108_v36, %v1593_v33 }
 0x2fc   : > { %v1155_v46 = vcombine.low %v1099_v40, %v1115_v42  ;;  %v1156_v48 = vcombine.high %v1099_v40, %v1115_v42  ;;  %v1171_v49 = vcombine.low %v1106_v41, %v1122_v43  ;;  %v1172_v50 = vcombine.high %v1106_v41, %v1122_v43 }
 0x2fe   : > { %v1163_v53 = vrot.slane %v1155_v46, %v1595_v47  ;;  %v1170_v54 = vrot.slane %v1156_v48, %v1595_v47  ;;  %v1179_v33 = vrot.slane %v1171_v49, %v1595_v47  ;;  %v1186_v55 = vrot.slane %v1172_v50, %v1595_v47 }
 0x300   : > { %v1187_v58 = vcombine.low %v1131_v51, %v1163_v53  ;;  %v1188_v59 = vcombine.high %v1131_v51, %v1163_v53  ;;  %v1189_v60 = vcombine.low %v1138_v52, %v1170_v54  ;;  %v1190_v61 = vcombine.high %v1138_v52, %v1170_v54 }
 0x301   : > { %v1191_v62 = vcombine.low %v1147_v56, %v1179_v33  ;;  %v1192_v63 = vcombine.high %v1147_v56, %v1179_v33  ;;  %v1193_v0 = vcombine.low %v1154_v57, %v1186_v55  ;;  %v1194_v1 = vcombine.high %v1154_v57, %v1186_v55 }
 0x302   : > { %1196 = vst.msk [vmem:[%s1671_s9 + $0x8] sm:$0xff] %vm245_vm1, %v1187_v58  ;;  %1198 = vst.msk [vmem:[%s1671_s9 + $0x18] sm:$0xff] %vm245_vm1, %v1188_v59 }
 0x303   : > { %1200 = vst.msk [vmem:[%s1671_s9 + $0x28] sm:$0xff] %vm245_vm1, %v1189_v60  ;;  %1202 = vst.msk [vmem:[%s1671_s9 + $0x38] sm:$0xff] %vm245_vm1, %v1190_v61 }
 0x304   : > { %1204 = vst.msk [vmem:[%s1671_s9 + $0x48] sm:$0xff] %vm245_vm1, %v1191_v62  ;;  %1206 = vst.msk [vmem:[%s1671_s9 + $0x58] sm:$0xff] %vm245_vm1, %v1192_v63 }
 0x305   : > { %1208 = vst.msk [vmem:[%s1671_s9 + $0x68] sm:$0xff] %vm245_vm1, %v1193_v0  ;;  %1210 = vst.msk [vmem:[%s1671_s9 + $0x78] sm:$0xff] %vm245_vm1, %v1194_v1 }
 0x306 PF: > { %s13_s14 = sadd.s32 1, %s1474_s14   ;;  %s1736_s12 = smov %s1470_s13 }
 0x307   : > { %p10_p5 = scmp.ge.s32.totalorder %s13_s14, 4   ;;  %s1737_s13 = smov %s1739_s15 }
 0x309   :  { %12 = sbr.rel (!%p10_p5) target bundleno = 2 (0x2), region = 65 }

</bundles_post_ra>
